<compile_context>
chip_gen: v5e
topology: v5e:2x2
jax: 0.10.0
libtpu: 0.0.40
codegen_flags: <defaults>
</compile_context>

<pallas_src>
import functools
import math

import jax
import jax.numpy as jnp
from jax.experimental import pallas as pl
from jax.experimental.pallas import tpu as pltpu


# Large negative instead of -inf: identical softmax output (exp underflows to 0) but never
# NaN for degenerate fully-masked rows (then zeroed for all-padded batch elements, matching
# the PyTorch masked_fill(..., 0) semantics).
NEG_INF = -1e30


def _mha_kernel(x_ref, pad_ref, wqkv_ref, bqkv_ref, wout_ref, bout_ref, o_ref,
                merged_ref, *, n_heads):
    f32 = jnp.float32
    bf = jnp.bfloat16

    x = x_ref[0]                                              # (T, F) bf16
    T, F = x.shape
    D = F // n_heads

    # Fused QKV projection (scale already folded into the Q columns by the wrapper).
    qkv = jnp.dot(x, wqkv_ref[...], preferred_element_type=f32) + bqkv_ref[...]   # (T, 3F)

    # Masks (shared by all heads).
    pad = pad_ref[0]                                          # (1, T) f32, 1.0 = padded key
    row = jax.lax.broadcasted_iota(jnp.int32, (T, T), 0)
    col = jax.lax.broadcasted_iota(jnp.int32, (T, T), 1)
    masked = jnp.logical_or(col > row, pad > 0.5)             # causal | padding
    # 0.0 iff every position of this batch element is padding (exact {0.,1.} scalar).
    not_all_pad = 1.0 - jnp.min(pad, axis=1, keepdims=True)   # (1, 1)

    # TODO(synk): static Python loop is fine for small H; for H >= 8 / long T a (B, H) or
    # flash-style grid axis would bound vreg live ranges and load-balance v7x's 2 cores.
    # (With D a multiple of 128 these head slices would also be lane-aligned.)
    for h in range(n_heads):
        q = qkv[:, h * D:(h + 1) * D].astype(bf)
        k = qkv[:, F + h * D:F + (h + 1) * D].astype(bf)
        v = qkv[:, 2 * F + h * D:2 * F + (h + 1) * D].astype(bf)

        s = jax.lax.dot_general(q, k, (((1,), (1,)), ((), ())),
                                preferred_element_type=f32)   # (T, T), scale pre-folded
        s = jnp.where(masked, NEG_INF, s)
        m = jnp.max(s, axis=-1, keepdims=True)
        e = jnp.exp(s - m)
        p = e * pl.reciprocal(jnp.sum(e, axis=-1, keepdims=True), approx=True)
        # TODO(synk): nn.Dropout on the attention weights is identity (eval mode).

        o_h = jnp.dot(p.astype(bf), v, preferred_element_type=f32)          # (T, D)
        merged_ref[:, h * D:(h + 1) * D] = o_h.astype(bf)

    # Output projection as ONE full-K GEMM over the merged heads.
    out = jnp.dot(merged_ref[...], wout_ref[...], preferred_element_type=f32)  # (T, F)
    o_ref[0] = (out * not_all_pad + bout_ref[...]).astype(o_ref.dtype)


def _prepare_params(params, n_heads):
    """bf16-cast the weights and fold the 1/sqrt(D) scale into the Q columns."""
    F = params["w_out"].shape[0]
    D = F // n_heads
    scale = 1.0 / math.sqrt(D)
    col_scale = jnp.concatenate(
        [jnp.full((F,), scale, jnp.float32), jnp.ones((2 * F,), jnp.float32)])
    return {
        "w_qkv": (params["w_qkv"] * col_scale).astype(jnp.bfloat16),   # (F, 3F) bf16
        "b_qkv": params["b_qkv"] * col_scale,                          # (1, 3F) f32
        "w_out": params["w_out"].astype(jnp.bfloat16),                 # (F, F)  bf16
        "b_out": params["b_out"],                                      # (1, F)  f32
    }


def _vmem_budget_bytes(T, F):
    weights = 2 * (F * 3 * F + F * F) * 2        # bf16 weights, double-buffered
    biases = 2 * (3 * F + F) * 4 * 2
    x_tiles = 2 * (T * F) * 2                    # bf16 x, double-buffered
    out_tiles = 2 * (T * F) * 4                  # f32 output, double-buffered
    qkv = T * 3 * F * 4                          # f32 qkv intermediate
    scores = 3 * T * T * 4                       # score/softmax temporaries
    merged = T * F * 2                           # bf16 merged-head scratch
    est = weights + biases + x_tiles + out_tiles + qkv + scores + merged
    return int(min(96 * 2 ** 20, max(32 * 2 ** 20, 2 * est)))


def multihead_attention_forward(x, padding_mask, params, *, n_heads):
    """Self-attention path of MultiheadAttention.forward.

    x: (B, T, F) float32; padding_mask: (B, T) bool (True = padded position).
    Returns (B, T, F) float32.
    """
    B, T, F = x.shape
    assert F % n_heads == 0
    out_dtype = x.dtype

    prepped = _prepare_params(params, n_heads)
    x_bf = x.astype(jnp.bfloat16)
    pad_f = padding_mask.astype(jnp.float32).reshape(B, 1, T)

    kernel = functools.partial(_mha_kernel, n_heads=n_heads)

    return pl.pallas_call(
        kernel,
        out_shape=jax.ShapeDtypeStruct((B, T, F), out_dtype),
        grid_spec=pltpu.PrefetchScalarGridSpec(
            num_scalar_prefetch=0,
            grid=(B,),
            in_specs=[
                pl.BlockSpec((1, T, F), lambda b: (b, 0, 0)),       # x (bf16), native layout
                pl.BlockSpec((1, 1, T), lambda b: (b, 0, 0)),       # padding mask
                pl.BlockSpec((F, 3 * F), lambda b: (0, 0)),         # qkv_proj W^T (bf16, resident)
                pl.BlockSpec((1, 3 * F), lambda b: (0, 0)),         # qkv_proj b   (f32)
                pl.BlockSpec((F, F), lambda b: (0, 0)),             # out_proj W^T (bf16, resident)
                pl.BlockSpec((1, F), lambda b: (0, 0)),             # out_proj b   (f32)
            ],
            out_specs=pl.BlockSpec((1, T, F), lambda b: (b, 0, 0)),
            scratch_shapes=[pltpu.VMEM((T, F), jnp.bfloat16)],      # merged-head scratch
        ),
        compiler_params=pltpu.CompilerParams(
            dimension_semantics=("parallel",),
            vmem_limit_bytes=_vmem_budget_bytes(T, F),
        ),
    )(x_bf, pad_f, prepped["w_qkv"], prepped["b_qkv"], prepped["w_out"], prepped["b_out"])


def multihead_attention_reference(x, padding_mask, params, *, n_heads):
    """Pure-JAX mirror with the same bf16-operand / f32-accumulation / folded-scale policy.

    Only intentional divergence from the kernel: exact (not EUP-approx) softmax reciprocal.
    """
    B, T, F = x.shape
    D = F // n_heads
    bf = jnp.bfloat16
    p = _prepare_params(params, n_heads)

    qkv = jnp.dot(x.astype(bf), p["w_qkv"], preferred_element_type=jnp.float32) + p["b_qkv"]
    q, k, v = jnp.split(qkv, 3, axis=-1)

    def split_heads(t):
        return t.reshape(B, T, n_heads, D).transpose(0, 2, 1, 3)    # (B, H, T, D)

    q, k, v = split_heads(q), split_heads(k), split_heads(v)
    s = jnp.einsum("bhqd,bhkd->bhqk", q.astype(bf), k.astype(bf),
                   preferred_element_type=jnp.float32)
    row = jax.lax.broadcasted_iota(jnp.int32, (T, T), 0)
    col = jax.lax.broadcasted_iota(jnp.int32, (T, T), 1)
    masked = jnp.logical_or((col > row)[None, None], padding_mask[:, None, None, :])
    s = jnp.where(masked, NEG_INF, s)
    m = jnp.max(s, axis=-1, keepdims=True)
    e = jnp.exp(s - m)
    w = e / jnp.sum(e, axis=-1, keepdims=True)
    o = jnp.einsum("bhqk,bhkd->bhqd", w.astype(bf), v.astype(bf),
                   preferred_element_type=jnp.float32)
    merged = o.transpose(0, 2, 1, 3).reshape(B, T, F)
    out = jnp.dot(merged.astype(bf), p["w_out"], preferred_element_type=jnp.float32)
    out = jnp.where(jnp.all(padding_mask, axis=-1)[:, None, None], 0.0, out)
    return out + p["b_out"]


def init_params(key, n_features):
    F = n_features
    k1, k2, k3, k4 = jax.random.split(key, 4)
    # _init_weights: weights ~ N(0, 0.02); biases keep nn.Linear default uniform init.
    w_qkv = 0.02 * jax.random.normal(k1, (F, 3 * F), jnp.float32)   # qkv_proj.weight.T
    w_out = 0.02 * jax.random.normal(k2, (F, F), jnp.float32)       # out_proj.weight.T
    bound = 1.0 / math.sqrt(F)
    b_qkv = jax.random.uniform(k3, (1, 3 * F), jnp.float32, -bound, bound)
    b_out = jax.random.uniform(k4, (1, F), jnp.float32, -bound, bound)
    return {"w_qkv": w_qkv, "b_qkv": b_qkv, "w_out": w_out, "b_out": b_out}


if __name__ == "__main__":
    B, T, F, H = 2, 8, 32, 4   # batch, seq, n_features, n_heads  (head dim = 8)

    key = jax.random.PRNGKey(0)
    kx, kp = jax.random.split(key)
    x = jax.random.normal(kx, (B, T, F), jnp.float32)
    # trailing-position padding (True = padded); position 0 is always valid.
    lengths = jnp.array([T, T - 3])
    padding_mask = jnp.arange(T)[None, :] >= lengths[:, None]       # (B, T) bool

    params = init_params(kp, F)

    out = multihead_attention_forward(x, padding_mask, params, n_heads=H)
    out = jax.block_until_ready(out)

    ref = multihead_attention_reference(x, padding_mask, params, n_heads=H)
    assert out.shape == (B, T, F)
    max_err = float(jnp.max(jnp.abs(out - ref)))
    # Tolerance covers the EUP approximate-reciprocal softmax denominator (only divergence
    # from the policy-matched reference).
    assert max_err < 1e-3, max_err

    print("KERNEL_OK")
</pallas_src>

<mosaic_0001>
module attributes {stable_mosaic.version = 11 : i64} {
  func.func @_mha_kernel(%arg0: i32, %arg1: memref<1x8x32xbf16, #tpu.memory_space<vmem>>, %arg2: memref<1x1x8xf32, #tpu.memory_space<vmem>>, %arg3: memref<32x96xbf16, #tpu.memory_space<vmem>>, %arg4: memref<1x96xf32, #tpu.memory_space<vmem>>, %arg5: memref<32x32xbf16, #tpu.memory_space<vmem>>, %arg6: memref<1x32xf32, #tpu.memory_space<vmem>>, %arg7: memref<1x8x32xf32, #tpu.memory_space<vmem>>, %arg8: memref<8x32xbf16, #tpu.memory_space<vmem>>) attributes {dimension_semantics = [#tpu.dimension_semantics<parallel>], iteration_bounds = array<i64: 2>, scalar_prefetch = 0 : i64, scratch_operands = 1 : i64, tpu.core_type = #tpu.core_type<tc>, window_params = [{transform_indices = @transform_0, window_bounds = array<i64: 1, 8, 32>}, {transform_indices = @transform_1, window_bounds = array<i64: 1, 1, 8>}, {pipeline_mode = #tpu.pipeline_mode<synchronous>, transform_indices = @transform_2, window_bounds = array<i64: 32, 96>}, {pipeline_mode = #tpu.pipeline_mode<synchronous>, transform_indices = @transform_3, window_bounds = array<i64: 1, 96>}, {pipeline_mode = #tpu.pipeline_mode<synchronous>, transform_indices = @transform_4, window_bounds = array<i64: 32, 32>}, {pipeline_mode = #tpu.pipeline_mode<synchronous>, transform_indices = @transform_5, window_bounds = array<i64: 1, 32>}, {transform_indices = @transform_6, window_bounds = array<i64: 1, 8, 32>}]} {
    %c0 = arith.constant 0 : index
    %c0_0 = arith.constant 0 : index
    %c0_1 = arith.constant 0 : index
    %0 = vector.load %arg1[%c0, %c0_0, %c0_1] : memref<1x8x32xbf16, #tpu.memory_space<vmem>>, vector<1x8x32xbf16>
    %1 = vector.shape_cast %0 : vector<1x8x32xbf16> to vector<8x32xbf16>
    %c0_2 = arith.constant 0 : index
    %c0_3 = arith.constant 0 : index
    %2 = vector.load %arg3[%c0_2, %c0_3] : memref<32x96xbf16, #tpu.memory_space<vmem>>, vector<32x96xbf16>
    %cst = arith.constant dense<0.000000e+00> : vector<8x96xf32>
    %3 = tpu.matmul %1, %2, %cst {dimension_numbers = #tpu.dot_dimension_numbers<[1], [0], [0], [1], [0, 0, 1, 1], [], []>} : vector<8x32xbf16>, vector<32x96xbf16>, vector<8x96xf32> -> vector<8x96xf32>
    %c0_4 = arith.constant 0 : index
    %c0_5 = arith.constant 0 : index
    %4 = vector.load %arg4[%c0_4, %c0_5] : memref<1x96xf32, #tpu.memory_space<vmem>>, vector<1x96xf32>
    %5 = vector.broadcast %4 : vector<1x96xf32> to vector<8x96xf32>
    %6 = arith.addf %3, %5 : vector<8x96xf32>
    %c0_6 = arith.constant 0 : index
    %c0_7 = arith.constant 0 : index
    %c0_8 = arith.constant 0 : index
    %7 = vector.load %arg2[%c0_6, %c0_7, %c0_8] : memref<1x1x8xf32, #tpu.memory_space<vmem>>, vector<1x1x8xf32>
    %8 = vector.shape_cast %7 : vector<1x1x8xf32> to vector<1x8xf32>
    %9 = tpu.iota {dimensions = array<i32: 0>} : vector<8x8xi32>
    %10 = tpu.iota {dimensions = array<i32: 1>} : vector<8x8xi32>
    %11 = arith.cmpi sgt, %10, %9 : vector<8x8xi32>
    %cst_9 = arith.constant 5.000000e-01 : f32
    %12 = vector.broadcast %cst_9 : f32 to vector<1x8xf32>
    %13 = arith.cmpf ogt, %8, %12 : vector<1x8xf32>
    %14 = vector.broadcast %13 : vector<1x8xi1> to vector<8x8xi1>
    %15 = arith.ori %11, %14 : vector<8x8xi1>
    %cst_10 = arith.constant dense<0x7F800000> : vector<1xf32>
    %16 = vector.multi_reduction <minimumf>, %8, %cst_10 [1] : vector<1x8xf32> to vector<1xf32>
    %17 = vector.shape_cast %16 : vector<1xf32> to vector<1x1xf32>
    %cst_11 = arith.constant 1.000000e+00 : f32
    %18 = vector.broadcast %cst_11 : f32 to vector<1x1xf32>
    %19 = arith.subf %18, %17 : vector<1x1xf32>
    %20 = vector.extract_strided_slice %6 {offsets = [0, 0], sizes = [8, 8], strides = [1, 1]} : vector<8x96xf32> to vector<8x8xf32>
    %21 = arith.truncf %20 : vector<8x8xf32> to vector<8x8xbf16>
    %22 = vector.extract_strided_slice %6 {offsets = [0, 32], sizes = [8, 8], strides = [1, 1]} : vector<8x96xf32> to vector<8x8xf32>
    %23 = arith.truncf %22 : vector<8x8xf32> to vector<8x8xbf16>
    %24 = vector.extract_strided_slice %6 {offsets = [0, 64], sizes = [8, 8], strides = [1, 1]} : vector<8x96xf32> to vector<8x8xf32>
    %25 = arith.truncf %24 : vector<8x8xf32> to vector<8x8xbf16>
    %cst_12 = arith.constant dense<0.000000e+00> : vector<8x8xf32>
    %26 = tpu.matmul %21, %23, %cst_12 {dimension_numbers = #tpu.dot_dimension_numbers<[1], [1], [0], [0], [0, 0, 1, 0], [], []>} : vector<8x8xbf16>, vector<8x8xbf16>, vector<8x8xf32> -> vector<8x8xf32>
    %cst_13 = arith.constant -1.000000e+30 : f32
    %27 = vector.broadcast %cst_13 : f32 to vector<8x8xf32>
    %28 = arith.select %15, %27, %26 : vector<8x8xi1>, vector<8x8xf32>
    %cst_14 = arith.constant dense<0xFF800000> : vector<8xf32>
    %29 = vector.multi_reduction <maximumf>, %28, %cst_14 [1] : vector<8x8xf32> to vector<8xf32>
    %30 = vector.shape_cast %29 : vector<8xf32> to vector<8x1xf32>
    %31 = vector.broadcast %30 : vector<8x1xf32> to vector<8x8xf32>
    %32 = arith.subf %28, %31 : vector<8x8xf32>
    %33 = math.exp %32 : vector<8x8xf32>
    %cst_15 = arith.constant dense<0.000000e+00> : vector<8xf32>
    %34 = vector.multi_reduction <add>, %33, %cst_15 [1] : vector<8x8xf32> to vector<8xf32>
    %35 = vector.shape_cast %34 : vector<8xf32> to vector<8x1xf32>
    %36 = tpu.reciprocal %35 {approx = true} : vector<8x1xf32> -> vector<8x1xf32>
    %37 = vector.broadcast %36 : vector<8x1xf32> to vector<8x8xf32>
    %38 = arith.mulf %33, %37 : vector<8x8xf32>
    %39 = arith.truncf %38 : vector<8x8xf32> to vector<8x8xbf16>
    %cst_16 = arith.constant dense<0.000000e+00> : vector<8x8xf32>
    %40 = tpu.matmul %39, %25, %cst_16 {dimension_numbers = #tpu.dot_dimension_numbers<[1], [0], [0], [1], [0, 0, 1, 1], [], []>} : vector<8x8xbf16>, vector<8x8xbf16>, vector<8x8xf32> -> vector<8x8xf32>
    %41 = arith.truncf %40 : vector<8x8xf32> to vector<8x8xbf16>
    %c0_17 = arith.constant 0 : index
    %c0_18 = arith.constant 0 : index
    %42 = vector.load %arg8[%c0_17, %c0_18] : memref<8x32xbf16, #tpu.memory_space<vmem>>, vector<8x8xbf16>
    tpu.vector_store %arg8[%c0_17, %c0_18], %41 {strides = array<i32>} : memref<8x32xbf16, #tpu.memory_space<vmem>>, vector<8x8xbf16>,
    %43 = vector.extract_strided_slice %6 {offsets = [0, 8], sizes = [8, 8], strides = [1, 1]} : vector<8x96xf32> to vector<8x8xf32>
    %44 = arith.truncf %43 : vector<8x8xf32> to vector<8x8xbf16>
    %45 = vector.extract_strided_slice %6 {offsets = [0, 40], sizes = [8, 8], strides = [1, 1]} : vector<8x96xf32> to vector<8x8xf32>
    %46 = arith.truncf %45 : vector<8x8xf32> to vector<8x8xbf16>
    %47 = vector.extract_strided_slice %6 {offsets = [0, 72], sizes = [8, 8], strides = [1, 1]} : vector<8x96xf32> to vector<8x8xf32>
    %48 = arith.truncf %47 : vector<8x8xf32> to vector<8x8xbf16>
    %cst_19 = arith.constant dense<0.000000e+00> : vector<8x8xf32>
    %49 = tpu.matmul %44, %46, %cst_19 {dimension_numbers = #tpu.dot_dimension_numbers<[1], [1], [0], [0], [0, 0, 1, 0], [], []>} : vector<8x8xbf16>, vector<8x8xbf16>, vector<8x8xf32> -> vector<8x8xf32>
    %cst_20 = arith.constant -1.000000e+30 : f32
    %50 = vector.broadcast %cst_20 : f32 to vector<8x8xf32>
    %51 = arith.select %15, %50, %49 : vector<8x8xi1>, vector<8x8xf32>
    %cst_21 = arith.constant dense<0xFF800000> : vector<8xf32>
    %52 = vector.multi_reduction <maximumf>, %51, %cst_21 [1] : vector<8x8xf32> to vector<8xf32>
    %53 = vector.shape_cast %52 : vector<8xf32> to vector<8x1xf32>
    %54 = vector.broadcast %53 : vector<8x1xf32> to vector<8x8xf32>
    %55 = arith.subf %51, %54 : vector<8x8xf32>
    %56 = math.exp %55 : vector<8x8xf32>
    %cst_22 = arith.constant dense<0.000000e+00> : vector<8xf32>
    %57 = vector.multi_reduction <add>, %56, %cst_22 [1] : vector<8x8xf32> to vector<8xf32>
    %58 = vector.shape_cast %57 : vector<8xf32> to vector<8x1xf32>
    %59 = tpu.reciprocal %58 {approx = true} : vector<8x1xf32> -> vector<8x1xf32>
    %60 = vector.broadcast %59 : vector<8x1xf32> to vector<8x8xf32>
    %61 = arith.mulf %56, %60 : vector<8x8xf32>
    %62 = arith.truncf %61 : vector<8x8xf32> to vector<8x8xbf16>
    %cst_23 = arith.constant dense<0.000000e+00> : vector<8x8xf32>
    %63 = tpu.matmul %62, %48, %cst_23 {dimension_numbers = #tpu.dot_dimension_numbers<[1], [0], [0], [1], [0, 0, 1, 1], [], []>} : vector<8x8xbf16>, vector<8x8xbf16>, vector<8x8xf32> -> vector<8x8xf32>
    %64 = arith.truncf %63 : vector<8x8xf32> to vector<8x8xbf16>
    %c0_24 = arith.constant 0 : index
    %c8 = arith.constant 8 : index
    %65 = vector.load %arg8[%c0_24, %c8] : memref<8x32xbf16, #tpu.memory_space<vmem>>, vector<8x8xbf16>
    tpu.vector_store %arg8[%c0_24, %c8], %64 {strides = array<i32>} : memref<8x32xbf16, #tpu.memory_space<vmem>>, vector<8x8xbf16>,
    %66 = vector.extract_strided_slice %6 {offsets = [0, 16], sizes = [8, 8], strides = [1, 1]} : vector<8x96xf32> to vector<8x8xf32>
    %67 = arith.truncf %66 : vector<8x8xf32> to vector<8x8xbf16>
    %68 = vector.extract_strided_slice %6 {offsets = [0, 48], sizes = [8, 8], strides = [1, 1]} : vector<8x96xf32> to vector<8x8xf32>
    %69 = arith.truncf %68 : vector<8x8xf32> to vector<8x8xbf16>
    %70 = vector.extract_strided_slice %6 {offsets = [0, 80], sizes = [8, 8], strides = [1, 1]} : vector<8x96xf32> to vector<8x8xf32>
    %71 = arith.truncf %70 : vector<8x8xf32> to vector<8x8xbf16>
    %cst_25 = arith.constant dense<0.000000e+00> : vector<8x8xf32>
    %72 = tpu.matmul %67, %69, %cst_25 {dimension_numbers = #tpu.dot_dimension_numbers<[1], [1], [0], [0], [0, 0, 1, 0], [], []>} : vector<8x8xbf16>, vector<8x8xbf16>, vector<8x8xf32> -> vector<8x8xf32>
    %cst_26 = arith.constant -1.000000e+30 : f32
    %73 = vector.broadcast %cst_26 : f32 to vector<8x8xf32>
    %74 = arith.select %15, %73, %72 : vector<8x8xi1>, vector<8x8xf32>
    %cst_27 = arith.constant dense<0xFF800000> : vector<8xf32>
    %75 = vector.multi_reduction <maximumf>, %74, %cst_27 [1] : vector<8x8xf32> to vector<8xf32>
    %76 = vector.shape_cast %75 : vector<8xf32> to vector<8x1xf32>
    %77 = vector.broadcast %76 : vector<8x1xf32> to vector<8x8xf32>
    %78 = arith.subf %74, %77 : vector<8x8xf32>
    %79 = math.exp %78 : vector<8x8xf32>
    %cst_28 = arith.constant dense<0.000000e+00> : vector<8xf32>
    %80 = vector.multi_reduction <add>, %79, %cst_28 [1] : vector<8x8xf32> to vector<8xf32>
    %81 = vector.shape_cast %80 : vector<8xf32> to vector<8x1xf32>
    %82 = tpu.reciprocal %81 {approx = true} : vector<8x1xf32> -> vector<8x1xf32>
    %83 = vector.broadcast %82 : vector<8x1xf32> to vector<8x8xf32>
    %84 = arith.mulf %79, %83 : vector<8x8xf32>
    %85 = arith.truncf %84 : vector<8x8xf32> to vector<8x8xbf16>
    %cst_29 = arith.constant dense<0.000000e+00> : vector<8x8xf32>
    %86 = tpu.matmul %85, %71, %cst_29 {dimension_numbers = #tpu.dot_dimension_numbers<[1], [0], [0], [1], [0, 0, 1, 1], [], []>} : vector<8x8xbf16>, vector<8x8xbf16>, vector<8x8xf32> -> vector<8x8xf32>
    %87 = arith.truncf %86 : vector<8x8xf32> to vector<8x8xbf16>
    %c0_30 = arith.constant 0 : index
    %c16 = arith.constant 16 : index
    %88 = vector.load %arg8[%c0_30, %c16] : memref<8x32xbf16, #tpu.memory_space<vmem>>, vector<8x8xbf16>
    tpu.vector_store %arg8[%c0_30, %c16], %87 {strides = array<i32>} : memref<8x32xbf16, #tpu.memory_space<vmem>>, vector<8x8xbf16>,
    %89 = vector.extract_strided_slice %6 {offsets = [0, 24], sizes = [8, 8], strides = [1, 1]} : vector<8x96xf32> to vector<8x8xf32>
    %90 = arith.truncf %89 : vector<8x8xf32> to vector<8x8xbf16>
    %91 = vector.extract_strided_slice %6 {offsets = [0, 56], sizes = [8, 8], strides = [1, 1]} : vector<8x96xf32> to vector<8x8xf32>
    %92 = arith.truncf %91 : vector<8x8xf32> to vector<8x8xbf16>
    %93 = vector.extract_strided_slice %6 {offsets = [0, 88], sizes = [8, 8], strides = [1, 1]} : vector<8x96xf32> to vector<8x8xf32>
    %94 = arith.truncf %93 : vector<8x8xf32> to vector<8x8xbf16>
    %cst_31 = arith.constant dense<0.000000e+00> : vector<8x8xf32>
    %95 = tpu.matmul %90, %92, %cst_31 {dimension_numbers = #tpu.dot_dimension_numbers<[1], [1], [0], [0], [0, 0, 1, 0], [], []>} : vector<8x8xbf16>, vector<8x8xbf16>, vector<8x8xf32> -> vector<8x8xf32>
    %cst_32 = arith.constant -1.000000e+30 : f32
    %96 = vector.broadcast %cst_32 : f32 to vector<8x8xf32>
    %97 = arith.select %15, %96, %95 : vector<8x8xi1>, vector<8x8xf32>
    %cst_33 = arith.constant dense<0xFF800000> : vector<8xf32>
    %98 = vector.multi_reduction <maximumf>, %97, %cst_33 [1] : vector<8x8xf32> to vector<8xf32>
    %99 = vector.shape_cast %98 : vector<8xf32> to vector<8x1xf32>
    %100 = vector.broadcast %99 : vector<8x1xf32> to vector<8x8xf32>
    %101 = arith.subf %97, %100 : vector<8x8xf32>
    %102 = math.exp %101 : vector<8x8xf32>
    %cst_34 = arith.constant dense<0.000000e+00> : vector<8xf32>
    %103 = vector.multi_reduction <add>, %102, %cst_34 [1] : vector<8x8xf32> to vector<8xf32>
    %104 = vector.shape_cast %103 : vector<8xf32> to vector<8x1xf32>
    %105 = tpu.reciprocal %104 {approx = true} : vector<8x1xf32> -> vector<8x1xf32>
    %106 = vector.broadcast %105 : vector<8x1xf32> to vector<8x8xf32>
    %107 = arith.mulf %102, %106 : vector<8x8xf32>
    %108 = arith.truncf %107 : vector<8x8xf32> to vector<8x8xbf16>
    %cst_35 = arith.constant dense<0.000000e+00> : vector<8x8xf32>
    %109 = tpu.matmul %108, %94, %cst_35 {dimension_numbers = #tpu.dot_dimension_numbers<[1], [0], [0], [1], [0, 0, 1, 1], [], []>} : vector<8x8xbf16>, vector<8x8xbf16>, vector<8x8xf32> -> vector<8x8xf32>
    %110 = arith.truncf %109 : vector<8x8xf32> to vector<8x8xbf16>
    %c0_36 = arith.constant 0 : index
    %c24 = arith.constant 24 : index
    %111 = vector.load %arg8[%c0_36, %c24] : memref<8x32xbf16, #tpu.memory_space<vmem>>, vector<8x8xbf16>
    tpu.vector_store %arg8[%c0_36, %c24], %110 {strides = array<i32>} : memref<8x32xbf16, #tpu.memory_space<vmem>>, vector<8x8xbf16>,
    %c0_37 = arith.constant 0 : index
    %c0_38 = arith.constant 0 : index
    %112 = vector.load %arg8[%c0_37, %c0_38] : memref<8x32xbf16, #tpu.memory_space<vmem>>, vector<8x32xbf16>
    %c0_39 = arith.constant 0 : index
    %c0_40 = arith.constant 0 : index
    %113 = vector.load %arg5[%c0_39, %c0_40] : memref<32x32xbf16, #tpu.memory_space<vmem>>, vector<32x32xbf16>
    %cst_41 = arith.constant dense<0.000000e+00> : vector<8x32xf32>
    %114 = tpu.matmul %112, %113, %cst_41 {dimension_numbers = #tpu.dot_dimension_numbers<[1], [0], [0], [1], [0, 0, 1, 1], [], []>} : vector<8x32xbf16>, vector<32x32xbf16>, vector<8x32xf32> -> vector<8x32xf32>
    %115 = vector.broadcast %19 : vector<1x1xf32> to vector<8x32xf32>
    %116 = arith.mulf %114, %115 : vector<8x32xf32>
    %c0_42 = arith.constant 0 : index
    %c0_43 = arith.constant 0 : index
    %117 = vector.load %arg6[%c0_42, %c0_43] : memref<1x32xf32, #tpu.memory_space<vmem>>, vector<1x32xf32>
    %118 = vector.broadcast %117 : vector<1x32xf32> to vector<8x32xf32>
    %119 = arith.addf %116, %118 : vector<8x32xf32>
    %c0_44 = arith.constant 0 : index
    %c0_45 = arith.constant 0 : index
    %c0_46 = arith.constant 0 : index
    %120 = vector.load %arg7[%c0_44, %c0_45, %c0_46] : memref<1x8x32xf32, #tpu.memory_space<vmem>>, vector<1x8x32xf32>
    %121 = vector.shape_cast %120 : vector<1x8x32xf32> to vector<8x32xf32>
    %122 = vector.shape_cast %119 : vector<8x32xf32> to vector<1x8x32xf32>
    tpu.vector_store %arg7[%c0_44, %c0_45, %c0_46], %122 {strides = array<i32>} : memref<1x8x32xf32, #tpu.memory_space<vmem>>, vector<1x8x32xf32>,
    return
  }
  func.func @transform_0(%arg0: i32) -> (i32, i32, i32) {
    %c0_i32 = arith.constant 0 : i32
    %c0_i32_0 = arith.constant 0 : i32
    %c0_i32_1 = arith.constant 0 : i32
    return %arg0, %c0_i32, %c0_i32_0 : i32, i32, i32
  }
  func.func @transform_1(%arg0: i32) -> (i32, i32, i32) {
    %c0_i32 = arith.constant 0 : i32
    %c0_i32_0 = arith.constant 0 : i32
    %c0_i32_1 = arith.constant 0 : i32
    return %arg0, %c0_i32, %c0_i32_0 : i32, i32, i32
  }
  func.func @transform_2(%arg0: i32) -> (i32, i32) {
    %c0_i32 = arith.constant 0 : i32
    %c0_i32_0 = arith.constant 0 : i32
    %c0_i32_1 = arith.constant 0 : i32
    return %c0_i32, %c0_i32_0 : i32, i32
  }
  func.func @transform_3(%arg0: i32) -> (i32, i32) {
    %c0_i32 = arith.constant 0 : i32
    %c0_i32_0 = arith.constant 0 : i32
    %c0_i32_1 = arith.constant 0 : i32
    return %c0_i32, %c0_i32_0 : i32, i32
  }
  func.func @transform_4(%arg0: i32) -> (i32, i32) {
    %c0_i32 = arith.constant 0 : i32
    %c0_i32_0 = arith.constant 0 : i32
    %c0_i32_1 = arith.constant 0 : i32
    return %c0_i32, %c0_i32_0 : i32, i32
  }
  func.func @transform_5(%arg0: i32) -> (i32, i32) {
    %c0_i32 = arith.constant 0 : i32
    %c0_i32_0 = arith.constant 0 : i32
    %c0_i32_1 = arith.constant 0 : i32
    return %c0_i32, %c0_i32_0 : i32, i32
  }
  func.func @transform_6(%arg0: i32) -> (i32, i32, i32) {
    %c0_i32 = arith.constant 0 : i32
    %c0_i32_0 = arith.constant 0 : i32
    %c0_i32_1 = arith.constant 0 : i32
    return %arg0, %c0_i32, %c0_i32_0 : i32, i32, i32
  }
}

</mosaic_0001>

<bundles_post_ra>
// kernel: tpu_custom_call.1
= control target key start
LH: loop header
LB: loop body
LE: loop exit
PB: predicated region body
PF: predicated region fallthrough
CT: control target
= control target key end

     0   :  { %s1463_s0 = inlined_call_operand.hbm [shape: bf16[2,8,32], index: 0, kind: input, shape index: {}]   ;;  %s1464_s1 = inlined_call_operand.hbm [shape: f32[2,1,8], index: 1, kind: input, shape index: {}]   ;;  %s1465_s2 = inlined_call_operand.hbm [shape: bf16[32,96], index: 2, kind: input, shape index: {}]   ;;  %s1466_s3 = inlined_call_operand.vmem [shape: f32[1,96], index: 3, kind: input, shape index: {}]   ;;  %s1467_s4 = inlined_call_operand.hbm [shape: bf16[32,32], index: 4, kind: input, shape index: {}]   ;;  %s1468_s5 = inlined_call_operand.vmem [shape: f32[1,32], index: 5, kind: input, shape index: {}]   ;;  %s1469_s6 = inlined_call_operand.hbm [shape: f32[2,8,32], index: 6, kind: output, shape index: {}]  }
   0x1   :  { %1471 = sst [smem:[#allocation19_spill]] %s1465_s2 }
   0x2   :  { %1472 = sst [smem:[#allocation20_spill]] %s1467_s4 }
   0x3   :  { %11 = vsyncpa [#allocation4], 0 }
   0x4   :  { %13 = vsyncpa [#allocation4 + $0x1], 0 }
   0x5   :  { %14 = vsyncpa [#allocation7], 0 }
   0x6   :  { %16 = vsyncpa [#allocation7 + $0x1], 0 }
   0x7   :  { %17 = vsyncpa [#allocation10], 0 }
   0x8   :  { %18 = vsyncpa [#allocation5], 0 }
   0x9   :  { %20 = vsyncpa [#allocation5 + $0x1], 0  ;;  %s1218_s21 = smov 0   ;;  %s1220_s22 = smov 0  }
   0xa   :  { %s1222_s23 = smov 0   ;;  %s1224_s24 = smov 0  }
   0xb LB: > { %1473 = sst [smem:[#allocation17_spill]] %s1158_s23  ;;  %s1242_s28 = sadd.s32 4294967295, %s1162_s24   ;;  %s1162_s24 = sphi %s1224_s24, %s1490_s24   ;;  %s1158_s23 = sphi %s1222_s23, %s1487_s23   ;;  %s1154_s22 = sphi %s1220_s22, %s1489_s22   ;;  %s1150_s21 = sphi %s1218_s21, %s1488_s21  }
   0xc   : > { %s1474_s2 = sld [smem:[#allocation19_spill]]  ;;  %p812_p0 = scmp.ge.s32.totalorder %s1162_s24, 1 }
   0xd   : > { %p47_p1 = scmp.eq.s32.totalorder %s1242_s28, 0  ;;  %p193_p2 = scmp.lt.s32.totalorder %s1162_s24, 3 }
   0xe   : > { %s1164_s30 = smov [#allocation8]   ;;  %s1476_s4 = sld [smem:[#allocation20_spill]] }
   0xf   : > { %p1247_p3 = pnand %p812_p0, %p193_p2  ;;  %s206_s7 = sshll.u32 %s1164_s30, 4  ;;  %s207_s7 = int_to_ptr.vmem [resolvable:$true] %s206_s7 }
  0x10   : > { %s1165_s11 = smov [#allocation9]   ;;  %s1166_s13 = smov 64  }
  0x11   : > { %p871_p4 = pneg %p1247_p3  ;;  %s223_s12 = sshll.u32 %s1165_s11, 4  ;;  %s224_s12 = int_to_ptr.vmem [resolvable:$true] %s223_s12 }
  0x12   : > { %s204_s27 = sshll.u32 %s1474_s2, 4  ;;  %s1167_s14 = smov 4   ;;  %s205_s27 = int_to_ptr.hbm [resolvable:$true] %s204_s27 }
  0x13   : > { %p872_p6 = pnand %p871_p4, %p47_p1  ;;  %s811_s15 = sadd.s32 4294967294, %s1162_s24  }
  0x14   : > { %s221_s10 = sshll.u32 %s1476_s4, 4  ;;  %s1261_s16 = sadd.s32 1, %s1162_s24   ;;  %s222_s10 = int_to_ptr.hbm [resolvable:$true] %s221_s10 }
  0x15   : > { %874 = dma.hbm_to_vmem [thread:$0]  (!%p872_p6), %s205_s27, 256, %s207_s7, [#allocation7], %s1166_s13, %s1166_s13, %s1167_s14  }
  0x16   : > { %877 = dma.hbm_to_vmem [thread:$0]  (!%p872_p6), %s222_s10, 256, %s224_s12, [#allocation10], %s1166_s13, %s1166_s13, %s1167_s14  }
  0x17   : > { %s30_s17 = ssub.s32 %s1162_s24, %s1261_s16  ;;  %s33_s18 = sadd.s32 1, %s1158_s23 }
  0x18   : > { %p31_p7 = scmp.eq.s32.totalorder %s30_s17, 0  ;;  %p40_p8 = scmp.ne.s32.totalorder %s1158_s23, %s1154_s22 }
  0x19   : > { %p41_p9 = scmp.eq.s32.totalorder %s1162_s24, 0  ;;  %p46_p10 = scmp.ne.s32.totalorder %s1154_s22, %s1150_s21 }
  0x1a   : > { %s1272_s19 = scalar_select %p31_p7, %s1158_s23, %s33_s18  }
  0x1b   : > { %p1274_p11 = por %p41_p9, %p40_p8  ;;  %p1280_p12 = por %p47_p1, %p46_p10 }
  0x1c   : > { %1477 = sst [smem:[#allocation18_spill]] %s1272_s19  ;;  %p180_p13 = scmp.eq.s32.totalorder %s1242_s28, 1 }
  0x1d   : > { %p186_p0 = scmp.eq.s32.totalorder %s811_s15, 1  ;;  %p891_p2 = scmp.lt.s32.totalorder %s1162_s24, 2 }
  0x1e   : > { %s1287_s26 = sand.u32 1, %s1158_s23   ;;  %p1289_p4 = por %p180_p13, %p40_p8 }
  0x1f   : > { %p1293_p6 = por %p186_p0, %p46_p10  ;;  %s816_s7 = sshll.u32 %s1287_s26, 2 }
  0x20   : > { %s817_s8 = sshll.u32 %s1162_s24, 2  ;;  %s244_s12 = scalar_lea.vmem [#allocation3], %s816_s7 }
  0x21   : > { %s248_s11 = scalar_lea.hbm %s1463_s0, %s817_s8  ;;  %s252_s13 = sshll.u32 %s244_s12, 4  ;;  %s253_s13 = int_to_ptr.vmem [resolvable:$true] %s252_s13 }
  0x22   : > { %s250_s14 = sshll.u32 %s248_s11, 4  ;;  %p1304_p7 = pnand %p891_p2, %p1274_p11  ;;  %s251_s14 = int_to_ptr.hbm [resolvable:$true] %s250_s14 }
  0x23   : > { %s259_s17 = sand.u32 1, %s1162_s24   ;;  %s241_s18 = scalar_lea.sflag [#allocation4], %s1287_s26 }
  0x24   : > { %s1024_s2 = sshra.s32 %s251_s14, 4  ;;  %p1028_p9 = pneg %p1304_p7  ;;  %s1025_s2 = int_to_ptr.hbm [resolvable:$true] %s1024_s2 }
  0x25   : > { %s1026_s4 = scalar_lea.hbm %s1025_s2, 4  ;;  %s1031_s8 = scalar_lea.hbm %s1463_s0, 8 }
  0x26   : > { %p1027_p8 = scmp.ne.s32.totalorder %s1025_s2, %s1026_s4  ;;  %p1032_p11 = scmp.lt.s32.totalorder %s1025_s2, %s1463_s0 }
  0x27   : > { %p1033_p0 = scmp.lt.s32.totalorder %s1031_s8, %s1026_s4 }
  0x28   : > { %p1029_p10 = pnand %p1028_p9, %p1027_p8 }
  0x29   : > { %p1034_p2 = por %p1033_p0, %p1032_p11 }
  0x2a   : > { %p1030_p13 = pneg %p1029_p10 }
  0x2c   : > { %p1035_p5 = pnand %p1034_p2, %p1030_p13 }
  0x2e   : > { %1038 = shalt.err (!%p1035_p5)
}
  0x2f   : > { %881 = dma.hbm_to_vmem [thread:$0]  (!%p1304_p7), %s251_s14, 64, %s253_s13, %s241_s18  }
  0x30   : > { %s265_s19 = scalar_lea.hbm %s1464_s1, %s1162_s24  ;;  %s262_s7 = scalar_lea.vmem [#allocation6], %s1287_s26 }
  0x31   : > { %s269_s20 = sshll.u32 %s262_s7, 4  ;;  %s267_s23 = sshll.u32 %s265_s19, 4  ;;  %s270_s20 = int_to_ptr.vmem [resolvable:$true] %s269_s20  ;;  %s268_s23 = int_to_ptr.hbm [resolvable:$true] %s267_s23 }
  0x32   : > { %s260_s2 = scalar_lea.sflag [#allocation7], %s259_s17  ;;  %s1054_s4 = sshra.s32 %s268_s23, 4  ;;  %s1055_s4 = int_to_ptr.hbm [resolvable:$true] %s1054_s4 }
  0x33   : > { %s1056_s8 = scalar_lea.hbm %s1055_s4, 1  ;;  %s1061_s14 = scalar_lea.hbm %s1464_s1, 2 }
  0x34   : > { %p1057_p5 = scmp.ne.s32.totalorder %s1055_s4, %s1056_s8  ;;  %p1062_p13 = scmp.lt.s32.totalorder %s1055_s4, %s1464_s1 }
  0x35   : > { %p1063_p11 = scmp.lt.s32.totalorder %s1061_s14, %s1056_s8 }
  0x36   : > { %p1059_p8 = pnand %p1057_p5, %p1028_p9 }
  0x37   : > { %p1064_p0 = por %p1063_p11, %p1062_p13 }
  0x38   : > { %p1060_p10 = pneg %p1059_p8 }
  0x3a   : > { %p1065_p2 = pnand %p1064_p0, %p1060_p10 }
  0x3c   : > { %1068 = shalt.err (!%p1065_p2)
}
  0x3d   : > { %884 = dma.hbm_to_vmem [thread:$0]  (!%p1304_p7), %s268_s23, 16, %s270_s20, %s260_s2  }
  0x3e   : > { %278 = sbr.rel (%p1247_p3) target bundleno = 1157 (0x485), region = 44  ;;  %s1342_s19 = sand.u32 (!%p1247_p3), 1, %s1154_s22  }
  0x3f   : > { %s819_s26 = sshll.u32 (!%p1247_p3), %s1342_s19, 2  ;;  %s281_s17 = scalar_lea.sflag (!%p1247_p3), [#allocation4], %s1342_s19 }
  0x40   : > { %s284_s11 = scalar_lea.vmem (!%p1247_p3), [#allocation3], %s819_s26 }
  0x43   : > { %1129 = dma.done.wait (%p1280_p12), %s281_s17, 64  }
  0x44   : > { %1131 = vsyncadd (%p1280_p12), %s281_s17, 4294967232  ;;  %s290_s23 = sand.u32 1, %s1242_s28   ;;  %s293_s15 = scalar_lea.vmem [#allocation6], %s1342_s19 }
  0x45   : > { %s291_s29 = scalar_lea.sflag [#allocation7], %s290_s23 }
  0x46   : > { %1133 = dma.done.wait (%p1280_p12), %s291_s29, 16  }
  0x47   : > { %1135 = vsyncadd (%p1280_p12), %s291_s29, 4294967280 }
  0x48   : > { %1137 = dma.done.wait (%p47_p1), [#allocation7], 256  }
  0x49   : > { %1139 = vsyncadd (%p47_p1), [#allocation7], 4294967040 }
  0x4a   : > { %1141 = dma.done.wait (%p47_p1), [#allocation10], 256  }
  0x4b   : > { %1143 = vsyncadd (%p47_p1), [#allocation10], 4294967040  ;;  %v854_v0 = vld [vmem:[#allocation8 + $0x8] sm:$0xff]  ;;  %v853_v1 = vld [vmem:[#allocation8] sm:$0xff]  ;;  %vm359_vm0 = vcmask 261120   ;;  %s1168_s7 = smov 104   ;;  %v377_v20 = vlaneseq }
  0x4c   : > { %369 = vmatpush.bf16.msra.mxu0 %v854_v0  ;;  %v338_v2 = vld [vmem:[%s284_s11] sm:$0xf]  ;;  %v946_v3 = vld [vmem:[%s1466_s3] ss:$0 sm:$0xff]  ;;  %s1169_s20 = smov 120   ;;  %s1170_s2 = smov 96  }
  0x4d   : > { %s1171_s4 = smov 80   ;;  %s1172_s8 = smov 72   ;;  %vm396_vm1 = vcmask 64512   ;;  %v1388_v19 = vld [vmem:[%s293_s15] sm:$0x1]  ;;  %v1175_v21 = vmov 0  }
  0x4e   : > { %s1173_s9 = smov 88   ;;  %s1174_s13 = smov 112   ;;  %vm382_vm2 = vcmp.gt.f32.partialorder %v1388_v19, 0.5  ;;  %v378_v23 = vshrl.u32 %v377_v20, 7  ;;  %v380_v24 = vand.u32 127, %v377_v20  ;;  %vm434_vm6 = vcmask 1043456  }
  0x4f   : > { %v383_v22 = vsel %vm382_vm2, 1, %v1175_v21  ;;  %s1176_s14 = smov 64   ;;  %s1177_s18 = smov 40   ;;  %vm452_vm7 = vcmask 60416   ;;  %vm387_vm8 = vcmask 57344   ;;  %vm516_vm9 = vcmask 126016  }
  0x50   : > { %370 = vmatpush.bf16.msra.mxu0 %v853_v1  ;;  %v384_v25 = vperm.slane %v383_v22, 0  ;;  %vm381_vm3 = vcmp.gt.s32.totalorder %v380_v24, %v378_v23  ;;  %s1178_s10 = smov 56   ;;  %s1179_s26 = smov 48   ;;  %vm580_vm10 = vcmask 191616   ;;  %vm644_vm11 = vcmask 257216  }
  0x51   : > { %s1180_s17 = smov 8   ;;  %s1181_s11 = smov 16  }
  0x52   : > { %vm385_vm4 = vcmp.eq.s32.totalorder %v384_v25, 1  ;;  %s1182_s23 = smov 24   ;;  %s822_s29 = sshll.u32 %s1342_s19, 3 }
  0x53   : > { %831 = vmatmul.msk.bf16.vlgmr.msra.gmra.mxu0 %vm359_vm0, %v338_v2  ;;  %vm1391_vm5 = vmor %vm381_vm3, %vm385_vm4  ;;  %s850_s15 = sshll.u32 %s1242_s28, 3  ;;  %s688_s28 = scalar_lea.sflag [#allocation5], %s1342_s19 }
  0xd0   : > { %v372_v4 = vpop.f32.mrf.mxu0 }
  0xd1   : > { %v373_v5 = vadd.f32 %v946_v3, %v372_v4 }
  0xd3   : > { %v1368_v6 = vpack.c.bf16 %v373_v5, %v373_v5 }
  0xd5   : > { %582 = vrot.lane.b32.xlu2 %v1368_v6, %s1168_s7  ;;  %454 = vrot.lane.b32.xlu1 %v1368_v6, %s1169_s20  ;;  %s698_s7 = scalar_lea.hbm %s1469_s6, %s850_s15 }
  0xd6   : > { %394 = vrot.lane.b32.xlu0 %v1368_v6, %s1170_s2 }
  0xd8   : > { %v374_v7 = vpop.f32.mrf.mxu0 }
  0xdd   : > { %520 = vrot.lane.b32.xlu2 %v1368_v6, %s1171_s4  ;;  %584 = vrot.lane.b32.xlu1 %v1368_v6, %s1172_s8  ;;  %s336_s4 = scalar_lea.vmem [#allocation11], %s822_s29 }
  0xde   : > { %456 = vrot.lane.b32.xlu0 %v1368_v6, %s1173_s9  ;;  %s700_s8 = sshll.u32 %s336_s4, 4  ;;  %s702_s9 = sshll.u32 %s698_s7, 4  ;;  %s701_s8 = int_to_ptr.vmem [resolvable:$true] %s700_s8  ;;  %s703_s9 = int_to_ptr.hbm [resolvable:$true] %s702_s9 }
  0xe6   : > { %518 = vrot.lane.b32.xlu0 %v1368_v6, %s1174_s13  ;;  %s1098_s13 = sshra.s32 %s703_s9, 4  ;;  %s1099_s13 = int_to_ptr.hbm [resolvable:$true] %s1098_s13 }
  0xe7   : > { %p1105_p7 = scmp.lt.s32.totalorder %s1099_s13, %s1469_s6 }
 0x12f   : > { %v583_v8 = vpop.permute.xlu2 %582 }
 0x137   : > { %v521_v9 = vpop.permute.xlu2 %520 }
 0x138   : > { %v526_v10 = vsel %vm396_vm1, %v521_v9, 0 }
 0x139   : > { %535 = vmatpush.bf16.xpose.msrb.mxu0 %v526_v10 }
 0x147   : > { %v455_v11 = vpop.permute.xlu1 %454 }
 0x148   : > { %v395_v12 = vpop.permute.xlu0 %394 }
 0x149   : > { %v401_v13 = vsel %vm396_vm1, %v395_v12, 0 }
 0x14a   : > { %410 = vmatpush.bf16.xpose.msra.mxu1 %v401_v13 }
 0x14f   : > { %v585_v14 = vpop.permute.xlu1 %584 }
 0x150   : > { %v457_v15 = vpop.permute.xlu0 %456  ;;  %v590_v16 = vsel %vm396_vm1, %v585_v14, 0 }
 0x151   : > { %832 = vmatmul.msk.bf16.vlgmr.msra.gmra.mxu1 %vm396_vm1, %v1368_v6  ;;  %v462_v17 = vsel %vm396_vm1, %v457_v15, 0 }
 0x152   : > { %471 = vmatpush.bf16.xpose.msra.mxu3 %v462_v17 }
 0x158   : > { %v519_v18 = vpop.permute.xlu0 %518 }
 0x159   : > { %834 = vmatmul.msk.bf16.vlgmr.msra.gmra.mxu3 %vm396_vm1, %v455_v11  ;;  %836 = vmatmul.msk.bf16.vlgmr.msrb.gmra.mxu0 %vm396_vm1, %v519_v18 }
 0x15a   : > { %599 = vmatpush.bf16.xpose.msrb.mxu3 %v590_v16 }
 0x169   : > { %838 = vmatmul.msk.bf16.vlgmr.msrb.gmra.mxu3 %vm396_vm1, %v583_v8 }
 0x1ce   : > { %v412_v27 = vpop.f32.mrf.mxu1 }
 0x1cf   : > { %v416_v28 = vsel %vm1391_vm5, -1e+30, %v412_v27 }
 0x1d0   : > { %v417_v29 = vsel %vm396_vm1, %v416_v28, -inf }
 0x1d1   : > { %418 = vmax.xlane.f32.xlu1 %v417_v29 }
 0x1d6   : > { %v414_v30 = vpop.f32.mrf.mxu1  ;;  %v537_v31 = vpop.f32.mrf.mxu0 }
 0x1d7   : > { %v541_v36 = vsel %vm1391_vm5, -1e+30, %v537_v31 }
 0x1d8   : > { %v542_v38 = vsel %vm396_vm1, %v541_v36, -inf }
 0x1dc   : > { %v473_v32 = vpop.f32.mrf.mxu3 }
 0x1dd   : > { %v477_v33 = vsel %vm1391_vm5, -1e+30, %v473_v32 }
 0x1de   : > { %v539_v34 = vpop.f32.mrf.mxu0  ;;  %v478_v35 = vsel %vm396_vm1, %v477_v33, -inf }
 0x1df   : > { %479 = vmax.xlane.f32.xlu2 %v478_v35 }
 0x1e4   : > { %v475_v37 = vpop.f32.mrf.mxu3 }
 0x1e5   : > { %v855_v37 = vld [vmem:[#allocation9] sm:$0xff] }
 0x1e7   : > { %543 = vmax.xlane.f32.xlu2 %v542_v38  ;;  %v388_v38 = vsel %vm387_vm8, %v1388_v19, inf }
 0x1ec   : > { %v601_v39 = vpop.f32.mrf.mxu3 }
 0x1ed   : > { %v605_v40 = vsel %vm1391_vm5, -1e+30, %v601_v39 }
 0x1ee   : > { %v606_v41 = vsel %vm396_vm1, %v605_v40, -inf }
 0x1ef   : > { %607 = vmax.xlane.f32.xlu0 %v606_v41 }
 0x1f4   : > { %v603_v42 = vpop.f32.mrf.mxu3 }
 0x1ff   : > { %429 = vrot.lane.b32.xlu2 %v1368_v6, %s1176_s14  ;;  %s1100_s14 = scalar_lea.hbm %s1099_s13, 8 }
 0x200   : > { %p1101_p1 = scmp.ne.s32.totalorder %s1099_s13, %s1100_s14 }
 0x202   : > { %p1102_p3 = pnand %p1101_p1, %p1289_p4 }
 0x204   : > { %p1103_p12 = pneg %p1102_p3 }
 0x207   : > { %618 = vrot.lane.b32.xlu2 %v1368_v6, %s1177_s18 }
 0x244   : > { %v419_v43 = vpop.xlane.xlu1 %418 }
 0x245   : > { %v420_v44 = vsub.f32 %v416_v28, %v419_v43 }
 0x247   : > { %v421_v45 = vmul.f32 1.442695, %v420_v44 }
 0x249   : > { %948 = vpow2.f32 %v421_v45  ;;  %v947_v45 = vld [vmem:[%s1468_s5] ss:$0 sm:$0xff] }
 0x24f   : > { %v949_v46 = vpop.eup %948 }
 0x250   : > { %v423_v47 = vsel %vm396_vm1, %v949_v46, 0.0 }
 0x251   : > { %424 = vadd.xlane.f32.xlu1 %v423_v47 }
 0x252   : > { %v480_v48 = vpop.xlane.xlu2 %479 }
 0x253   : > { %v481_v51 = vsub.f32 %v477_v33, %v480_v48 }
 0x255   : > { %v482_v53 = vmul.f32 1.442695, %v481_v51 }
 0x25a   : > { %v544_v49 = vpop.xlane.xlu2 %543 }
 0x25b   : > { %v545_v50 = vsub.f32 %v541_v36, %v544_v49  ;;  %v856_v36 = vld [vmem:[#allocation9 + $0x8] sm:$0xff] }
 0x25c   : > { %672 = vmatpush.bf16.msra.mxu0 %v856_v36 }
 0x25d   : > { %v546_v52 = vmul.f32 1.442695, %v545_v50 }
 0x25f   : > { %950 = vpow2.f32 %v546_v52 }
 0x260   : > { %952 = vpow2.f32 %v482_v53  ;;  %673 = vmatpush.bf16.msra.mxu0 %v855_v37 }
 0x262   : > { %v430_v54 = vpop.permute.xlu2 %429  ;;  %v608_v55 = vpop.xlane.xlu0 %607 }
 0x263   : > { %v436_v56 = vsel %vm434_vm6, %v430_v54, 0  ;;  %v609_v58 = vsub.f32 %v605_v40, %v608_v55 }
 0x264   : > { %445 = vmatpush.bf16.msra.mxu2 %v436_v56 }
 0x265   : > { %v951_v57 = vpop.eup %950  ;;  %v610_v60 = vmul.f32 1.442695, %v609_v58 }
 0x266   : > { %v548_v59 = vsel %vm396_vm1, %v951_v57, 0.0  ;;  %v953_v61 = vpop.eup %952 }
 0x267   : > { %549 = vadd.xlane.f32.xlu0 %v548_v59  ;;  %954 = vpow2.f32 %v610_v60  ;;  %v484_v62 = vsel %vm396_vm1, %v953_v61, 0.0 }
 0x26a   : > { %490 = vrot.lane.b32.xlu1 %v1368_v6, %s1178_s10  ;;  %v619_v7 = vpop.permute.xlu2 %618 }
 0x26b   : > { %v624_v10 = vsel %vm434_vm6, %v619_v7, 0 }
 0x26d   : > { %v955_v63 = vpop.eup %954 }
 0x26e   : > { %v612_v0 = vsel %vm396_vm1, %v955_v63, 0.0 }
 0x26f   : > { %485 = vadd.xlane.f32.xlu0 %v484_v62 }
 0x277   : > { %613 = vadd.xlane.f32.xlu0 %v612_v0 }
 0x28b   : > { %554 = vrot.lane.b32.xlu0 %v1368_v6, %s1179_s26  ;;  %s1104_s26 = scalar_lea.hbm %s1469_s6, 16 }
 0x28c   : > { %p1106_p9 = scmp.lt.s32.totalorder %s1104_s26, %s1100_s14 }
 0x28e   : > { %p1107_p5 = por %p1106_p9, %p1105_p7 }
 0x290   : > { %p1108_p8 = pnand %p1107_p5, %p1103_p12 }
 0x2c4   : > { %v425_v1 = vpop.xlane.xlu1 %424 }
 0x2c5   : > { %956 = vrcp.f32 %v425_v1 }
 0x2cb   : > { %v957_v2 = vpop.eup %956 }
 0x2cc   : > { %v427_v3 = vmul.f32 %v957_v2, %v949_v46 }
 0x2ce   : > { %v428_v4 = vpack.c.bf16 %v427_v3, %v427_v3 }
 0x2d0   : > { %833 = vmatmul.msk.bf16.vlgmr.msra.gmra.mxu2 %vm396_vm1, %v428_v4 }
 0x2da   : > { %v550_v5 = vpop.xlane.xlu0 %549 }
 0x2dc   : > { %v491_v8 = vpop.permute.xlu1 %490 }
 0x2dd   : > { %v496_v9 = vsel %vm434_vm6, %v491_v8, 0 }
 0x2de   : > { %505 = vmatpush.bf16.msrb.mxu2 %v496_v9 }
 0x2e2   : > { %633 = vmatpush.bf16.msra.mxu2 %v624_v10  ;;  %v486_v11 = vpop.xlane.xlu0 %485 }
 0x2e3   : > { %958 = vrcp.f32 %v486_v11 }
 0x2e9   : > { %v959_v12 = vpop.eup %958 }
 0x2ea   : > { %v488_v6 = vmul.f32 %v959_v12, %v953_v61  ;;  %v614_v13 = vpop.xlane.xlu0 %613 }
 0x2eb   : > { %960 = vrcp.f32 %v614_v13 }
 0x2ec   : > { %v489_v14 = vpack.c.bf16 %v488_v6, %v488_v6  ;;  %962 = vrcp.f32 %v550_v5 }
 0x2ee   : > { %835 = vmatmul.msk.bf16.vlgmr.msrb.gmra.mxu2 %vm396_vm1, %v489_v14 }
 0x2f1   : > { %v961_v15 = vpop.eup %960 }
 0x2f2   : > { %v616_v16 = vmul.f32 %v961_v15, %v955_v63  ;;  %v963_v17 = vpop.eup %962 }
 0x2f3   : > { %v552_v18 = vmul.f32 %v963_v17, %v951_v57 }
 0x2f4   : > { %v617_v20 = vpack.c.bf16 %v616_v16, %v616_v16 }
 0x2f5   : > { %v553_v23 = vpack.c.bf16 %v552_v18, %v552_v18 }
 0x2fd   : > { %v555_v21 = vpop.permute.xlu0 %554 }
 0x2fe   : > { %839 = vmatmul.msk.bf16.vlgmr.msra.gmra.mxu2 %vm396_vm1, %v617_v20  ;;  %v560_v22 = vsel %vm434_vm6, %v555_v21, 0 }
 0x2ff   : > { %569 = vmatpush.bf16.msrb.mxu1 %v560_v22 }
 0x302   : > { %837 = vmatmul.msk.bf16.vlgmr.msrb.gmra.mxu1 %vm396_vm1, %v553_v23 }
 0x353   : > { %v447_v24 = vpop.f32.mrf.mxu2 }
 0x354   : > { %v451_v25 = vpack.c.bf16 %v447_v24, %v447_v24 }
 0x356   : > { %453 = vst.msk [vmem:[#allocation2] sm:$0xf] %vm452_vm7, %v451_v25 }
 0x35b   : > { %v449_v26 = vpop.f32.mrf.mxu2 }
 0x371   : > { %v507_v27 = vpop.f32.mrf.mxu2 }
 0x372   : > { %v511_v28 = vpack.c.bf16 %v507_v27, %v507_v27 }
 0x374   : > { %513 = vrot.lane.b32.xlu1 %v511_v28, %s1180_s17 }
 0x379   : > { %v509_v29 = vpop.f32.mrf.mxu2 }
 0x37f   : > { %v571_v30 = vpop.f32.mrf.mxu1 }
 0x380   : > { %v575_v31 = vpack.c.bf16 %v571_v30, %v571_v30 }
 0x381   : > { %v635_v32 = vpop.f32.mrf.mxu2 }
 0x382   : > { %v639_v33 = vpack.c.bf16 %v635_v32, %v635_v32  ;;  %577 = vrot.lane.b32.xlu2 %v575_v31, %s1181_s11 }
 0x384   : > { %641 = vrot.lane.b32.xlu1 %v639_v33, %s1182_s23 }
 0x387   : > { %v573_v34 = vpop.f32.mrf.mxu1 }
 0x389   : > { %v637_v35 = vpop.f32.mrf.mxu2 }
 0x3ab   : > { %389 = vmin.xlane.f32.xlu2 %v388_v38 }
 0x3dc   : > { %v578_v40 = vpop.permute.xlu2 %577 }
 0x3e6   : > { %v514_v39 = vpop.permute.xlu1 %513 }
 0x3e7   : > { %517 = vst.msk [vmem:[#allocation2] sm:$0xf] %vm516_vm9, %v514_v39 }
 0x3e8   : > { %581 = vst.msk [vmem:[#allocation2] sm:$0xf] %vm580_vm10, %v578_v40 }
 0x3f6   : > { %v642_v41 = vpop.permute.xlu1 %641 }
 0x3f7   : > { %645 = vst.msk [vmem:[#allocation2] sm:$0xf] %vm644_vm11, %v642_v41 }
 0x3fe   : > { %v646_v42 = vld [vmem:[#allocation2] sm:$0xf] }
 0x3ff   : > { %848 = vmatmul.msk.bf16.vlgmr.msra.gmra.mxu0 %vm359_vm0, %v646_v42 }
 0x41e   : > { %v390_v43 = vpop.xlane.xlu2 %389 }
 0x41f   : > { %v391_v44 = vsub.f32 1.0, %v390_v43 }
 0x421   : > { %v679_v19 = vperm.slane %v391_v44, 0 }
 0x47c   : > { %v675_v46 = vpop.f32.mrf.mxu0 }
 0x47d   : > { %v680_v47 = vmul.f32 %v679_v19, %v675_v46 }
 0x47f   : > { %v685_v48 = vadd.f32 %v947_v45, %v680_v47 }
 0x481   : > { %686 = vst.msk [vmem:[%s336_s4] sm:$0xff] %vm359_vm0, %v685_v48 }
 0x482   : > { %1111 = shalt.err (!%p1108_p8)
}
 0x483   : > { %869 = dma.vmem_to_hbm [thread:$0]  (%p1289_p4), %s701_s8, 128, %s703_s9, %s688_s28  }
 0x484   : > { %v677_v49 = vpop.f32.mrf.mxu0 }
 0x485 PF: > { %s714_s19 = sand.u32 1, %s1150_s21   ;;  %p1485_p10 = scmp.ge.s32.totalorder %s1162_s24, 2 }
 0x486   : > { %s715_s23 = scalar_lea.sflag [#allocation5], %s714_s19 }
 0x487   : > { %p886_p13 = pnand %p1485_p10, %p1293_p6 }
 0x489   : > { %p887_p11 = pneg %p886_p13 }
 0x48b   : > { %1145 = dma.done.wait (%p887_p11), %s715_s23, 128  }
 0x48c   : > { %1147 = vsyncadd (%p887_p11), %s715_s23, 4294967168  ;;  %s1486_s29 = sld [smem:[#allocation17_spill]]  ;;  %p23_p0 = scmp.ge.s32.totalorder %s1261_s16, 4  }
 0x48d   : > { %s1487_s23 = sld [smem:[#allocation18_spill]]  ;;  %s1488_s21 = smov %s1154_s22 }
 0x48e   : > { %s1490_s24 = smov %s1261_s16  ;;  %25 = sbr.rel (!%p23_p0) target bundleno = 11 (0xb), region = 110 }
 0x492   : > { %s1489_s22 = smov %s1486_s29 }
 0x493   :  { %721 = vsyncpa [#allocation4], 1 }
 0x494   :  { %723 = vsyncpa [#allocation4 + $0x1], 1 }
 0x495   :  { %724 = vsyncpa [#allocation7], 1 }
 0x496   :  { %726 = vsyncpa [#allocation7 + $0x1], 1 }
 0x497   :  { %727 = vsyncpa [#allocation10], 1 }
 0x498   :  { %728 = vsyncpa [#allocation5], 1 }
 0x499   :  { %730 = vsyncpa [#allocation5 + $0x1], 1 }

</bundles_post_ra>
